<compile_context>
chip_gen: v6e
topology: v6e:2x2x1
jax: 0.10.0
libtpu: 0.0.40
codegen_flags: <defaults>
</compile_context>

<pallas_src>
import jax
import jax.numpy as jnp
from jax.experimental import pallas as pl
from jax.experimental.pallas import tpu as pltpu


def _round_up(x, m):
    return (x + m - 1) // m * m


def _encoder_kernel(patches_ref, w1_ref, b1_ref, wf_ref, bf_ref, pm_ref, out_ref):
    # patches: (Bt*N, Pp)  bf16     w1: (Pp, Dhp) bf16   b1: (1, Dhp) f32
    # wf:      (Dhp, Ep)   bf16     bf: (1, Ep)   f32
    # pm:      (Bt, Bt*N)  f32  (block-diag mean-pool matrix, entries 1/N)
    # out:     (Bt, Ep)    f32
    h = jnp.dot(patches_ref[...], w1_ref[...],
                preferred_element_type=jnp.float32)                 # (Bt*N, Dhp)
    # TODO(synk): PyTorch nn.GELU defaults to the exact erf form; the tanh
    # approximation is used here (encoder is synthetic anyway).
    h = jax.nn.gelu(h + b1_ref[...])                                # f32 VPU/EUP

    # mean pool over patches as a tiny MXU matmul (keeps everything 2-D)
    pooled = jnp.dot(pm_ref[...], h,
                     preferred_element_type=jnp.float32)            # (Bt, Dhp)

    # fused (W2 @ Wp) projection
    proj = jnp.dot(pooled.astype(wf_ref.dtype), wf_ref[...],
                   preferred_element_type=jnp.float32) + bf_ref[...]  # (Bt, Ep)

    # image_features / image_features.norm(dim=-1, keepdim=True)
    # (padded E lanes of proj are exactly zero, so they don't affect the norm)
    inv = jax.lax.rsqrt(jnp.sum(proj * proj, axis=-1, keepdims=True))
    out_ref[...] = proj * inv


def clip_image_features(x, params, patch=4, block_batch=None):
    """x: (B, C, H, W) float32 NCHW.  Returns L2-normalized features (B, E)."""
    B, C, H, W = x.shape
    nh, nw = H // patch, W // patch
    N = nh * nw

    # TODO(synk): at real CLIP sizes, express patchification through the
    # BlockSpec index_map (or take NHWC) instead of this wrapper transpose,
    # which materializes an extra HBM copy of the image tensor.
    patches = x.reshape(B, C, nh, patch, nw, patch)
    patches = patches.transpose(0, 2, 4, 1, 3, 5).reshape(B * N, C * patch * patch)

    w1, b1, w2, b2, wp = params
    P = patches.shape[-1]
    Dh = w1.shape[-1]
    E = wp.shape[-1]

    # Hoisted mean-pool: mean_n(h_n @ W2 + b2) @ Wp == (mean_n h_n) @ (W2@Wp) + b2@Wp
    wf = w2 @ wp                         # (Dh, E)
    bf = b2 @ wp                         # (1, E)

    # Pad lane dims to multiples of 128 (unmasked vld/vst, full MXU tiles).
    Pp = _round_up(P, 128)
    Dhp = _round_up(Dh, 128)
    Ep = _round_up(E, 128)

    patches_p = jnp.pad(patches, ((0, 0), (0, Pp - P))).astype(jnp.bfloat16)
    w1_p = jnp.pad(w1, ((0, Pp - P), (0, Dhp - Dh))).astype(jnp.bfloat16)
    b1_p = jnp.pad(b1, ((0, 0), (0, Dhp - Dh))).astype(jnp.float32)
    wf_p = jnp.pad(wf, ((0, Dhp - Dh), (0, Ep - E))).astype(jnp.bfloat16)
    bf_p = jnp.pad(bf, ((0, 0), (0, Ep - E))).astype(jnp.float32)

    # Batch-tile size per grid step (whole batch in one step at toy sizes;
    # at real sizes pick Bt so there are >= 2 parallel steps per TensorCore).
    Bt = B if block_batch is None else block_batch
    assert B % Bt == 0, "batch must be divisible by the batch tile"

    # Block-diagonal mean-pool matrix: pooled[b] = (1/N) * sum_n h[b*N + n]
    pm = jnp.kron(jnp.eye(Bt, dtype=jnp.float32),
                  jnp.full((1, N), 1.0 / N, jnp.float32))            # (Bt, Bt*N)

    grid = (B // Bt,)
    out = pl.pallas_call(
        _encoder_kernel,
        out_shape=jax.ShapeDtypeStruct((B, Ep), jnp.float32),
        grid_spec=pltpu.PrefetchScalarGridSpec(
            num_scalar_prefetch=0,
            grid=grid,
            in_specs=[
                pl.BlockSpec((Bt * N, Pp), lambda i: (i, 0)),   # patches (per tile)
                pl.BlockSpec((Pp, Dhp), lambda i: (0, 0)),      # w1 (grid-invariant)
                pl.BlockSpec((1, Dhp), lambda i: (0, 0)),       # b1
                pl.BlockSpec((Dhp, Ep), lambda i: (0, 0)),      # fused W2@Wp
                pl.BlockSpec((1, Ep), lambda i: (0, 0)),        # fused b2@Wp
                pl.BlockSpec((Bt, Bt * N), lambda i: (0, 0)),   # pool matrix
            ],
            out_specs=pl.BlockSpec((Bt, Ep), lambda i: (i, 0)),
        ),
        compiler_params=pltpu.CompilerParams(
            dimension_semantics=("parallel",),
            vmem_limit_bytes=64 * 1024 * 1024),
    )(patches_p, w1_p, b1_p, wf_p, bf_p, pm)

    return out[:, :E]


def init_params(key, patch_dim, hidden, feat_dim, embed_dim):
    k1, k2, k3 = jax.random.split(key, 3)
    w1 = jax.random.normal(k1, (patch_dim, hidden), jnp.float32) * 0.02
    b1 = jnp.zeros((1, hidden), jnp.float32)
    w2 = jax.random.normal(k2, (hidden, feat_dim), jnp.float32) * 0.02
    b2 = jnp.zeros((1, feat_dim), jnp.float32)
    wp = jax.random.normal(k3, (feat_dim, embed_dim), jnp.float32) * 0.02
    # logit_scale = log(1/0.07) exists as a parameter but is unused in forward.
    return (w1, b1, w2, b2, wp)


def _reference(x, params, patch):
    """Pure-JAX f32 reference (un-hoisted pooling) for a sanity check."""
    B, C, H, W = x.shape
    nh, nw = H // patch, W // patch
    patches = x.reshape(B, C, nh, patch, nw, patch)
    patches = patches.transpose(0, 2, 4, 1, 3, 5).reshape(B, nh * nw, C * patch * patch)
    w1, b1, w2, b2, wp = params
    h = jax.nn.gelu(patches @ w1 + b1)
    f = h @ w2 + b2
    pooled = f.mean(axis=1)
    proj = pooled @ wp
    return proj / jnp.linalg.norm(proj, axis=-1, keepdims=True)


if __name__ == "__main__":
    key = jax.random.PRNGKey(0)
    kx, kp = jax.random.split(key)

    B, C, H, W = 2, 3, 16, 16          # NCHW, like PyTorch
    patch = 4
    patch_dim = C * patch * patch      # 48
    hidden, feat_dim, embed_dim = 64, 32, 32

    x = jax.random.normal(kx, (B, C, H, W), jnp.float32)
    params = init_params(kp, patch_dim, hidden, feat_dim, embed_dim)

    feats = clip_image_features(x, params, patch=patch)
    feats = jax.block_until_ready(feats)

    # sanity 1: output rows are unit-norm (x / x.norm(dim=-1, keepdim=True))
    norms = jnp.linalg.norm(feats, axis=-1)
    assert feats.shape == (B, embed_dim)
    assert bool(jnp.all(jnp.isfinite(feats)))
    assert jnp.allclose(norms, 1.0, atol=1e-3), norms

    # sanity 2: matches the un-hoisted f32 reference (loose tol for bf16 MXU)
    ref = _reference(x, params, patch)
    assert jnp.allclose(feats, ref, atol=3e-2), jnp.max(jnp.abs(feats - ref))

    print("KERNEL_OK")
</pallas_src>

<mosaic_0001>
module attributes {stable_mosaic.version = 11 : i64} {
  func.func @_encoder_kernel(%arg0: i32, %arg1: memref<32x128xbf16, #tpu.memory_space<vmem>>, %arg2: memref<128x128xbf16, #tpu.memory_space<vmem>>, %arg3: memref<1x128xf32, #tpu.memory_space<vmem>>, %arg4: memref<128x128xbf16, #tpu.memory_space<vmem>>, %arg5: memref<1x128xf32, #tpu.memory_space<vmem>>, %arg6: memref<2x32xf32, #tpu.memory_space<vmem>>, %arg7: memref<2x128xf32, #tpu.memory_space<vmem>>) attributes {dimension_semantics = [#tpu.dimension_semantics<parallel>], iteration_bounds = array<i64: 1>, scalar_prefetch = 0 : i64, scratch_operands = 0 : i64, tpu.core_type = #tpu.core_type<tc>, window_params = [{transform_indices = @transform_0, window_bounds = array<i64: 32, 128>}, {pipeline_mode = #tpu.pipeline_mode<synchronous>, transform_indices = @transform_1, window_bounds = array<i64: 128, 128>}, {pipeline_mode = #tpu.pipeline_mode<synchronous>, transform_indices = @transform_2, window_bounds = array<i64: 1, 128>}, {pipeline_mode = #tpu.pipeline_mode<synchronous>, transform_indices = @transform_3, window_bounds = array<i64: 128, 128>}, {pipeline_mode = #tpu.pipeline_mode<synchronous>, transform_indices = @transform_4, window_bounds = array<i64: 1, 128>}, {pipeline_mode = #tpu.pipeline_mode<synchronous>, transform_indices = @transform_5, window_bounds = array<i64: 2, 32>}, {transform_indices = @transform_6, window_bounds = array<i64: 2, 128>}]} {
    %c0 = arith.constant 0 : index
    %c0_0 = arith.constant 0 : index
    %0 = vector.load %arg1[%c0, %c0_0] : memref<32x128xbf16, #tpu.memory_space<vmem>>, vector<32x128xbf16>
    %c0_1 = arith.constant 0 : index
    %c0_2 = arith.constant 0 : index
    %1 = vector.load %arg2[%c0_1, %c0_2] : memref<128x128xbf16, #tpu.memory_space<vmem>>, vector<128x128xbf16>
    %cst = arith.constant dense<0.000000e+00> : vector<32x128xf32>
    %2 = tpu.matmul %0, %1, %cst {dimension_numbers = #tpu.dot_dimension_numbers<[1], [0], [0], [1], [0, 0, 1, 1], [], []>} : vector<32x128xbf16>, vector<128x128xbf16>, vector<32x128xf32> -> vector<32x128xf32>
    %c0_3 = arith.constant 0 : index
    %c0_4 = arith.constant 0 : index
    %3 = vector.load %arg3[%c0_3, %c0_4] : memref<1x128xf32, #tpu.memory_space<vmem>>, vector<1x128xf32>
    %4 = vector.broadcast %3 : vector<1x128xf32> to vector<32x128xf32>
    %5 = arith.addf %2, %4 : vector<32x128xf32>
    %6 = arith.mulf %5, %5 : vector<32x128xf32>
    %7 = arith.mulf %5, %6 : vector<32x128xf32>
    %cst_5 = arith.constant 4.471500e-02 : f32
    %8 = vector.broadcast %cst_5 : f32 to vector<32x128xf32>
    %9 = arith.mulf %8, %7 : vector<32x128xf32>
    %10 = arith.addf %5, %9 : vector<32x128xf32>
    %cst_6 = arith.constant 0.797884583 : f32
    %11 = vector.broadcast %cst_6 : f32 to vector<32x128xf32>
    %12 = arith.mulf %11, %10 : vector<32x128xf32>
    %13 = math.tanh %12 : vector<32x128xf32>
    %cst_7 = arith.constant 1.000000e+00 : f32
    %14 = vector.broadcast %cst_7 : f32 to vector<32x128xf32>
    %15 = arith.addf %14, %13 : vector<32x128xf32>
    %cst_8 = arith.constant 5.000000e-01 : f32
    %16 = vector.broadcast %cst_8 : f32 to vector<32x128xf32>
    %17 = arith.mulf %16, %15 : vector<32x128xf32>
    %18 = arith.mulf %5, %17 : vector<32x128xf32>
    %c0_9 = arith.constant 0 : index
    %c0_10 = arith.constant 0 : index
    %19 = vector.load %arg6[%c0_9, %c0_10] : memref<2x32xf32, #tpu.memory_space<vmem>>, vector<2x32xf32>
    %cst_11 = arith.constant dense<0.000000e+00> : vector<2x128xf32>
    %20 = tpu.matmul %19, %18, %cst_11 {dimension_numbers = #tpu.dot_dimension_numbers<[1], [0], [0], [1], [0, 0, 1, 1], [], []>} : vector<2x32xf32>, vector<32x128xf32>, vector<2x128xf32> -> vector<2x128xf32>
    %21 = arith.truncf %20 : vector<2x128xf32> to vector<2x128xbf16>
    %c0_12 = arith.constant 0 : index
    %c0_13 = arith.constant 0 : index
    %22 = vector.load %arg4[%c0_12, %c0_13] : memref<128x128xbf16, #tpu.memory_space<vmem>>, vector<128x128xbf16>
    %cst_14 = arith.constant dense<0.000000e+00> : vector<2x128xf32>
    %23 = tpu.matmul %21, %22, %cst_14 {dimension_numbers = #tpu.dot_dimension_numbers<[1], [0], [0], [1], [0, 0, 1, 1], [], []>} : vector<2x128xbf16>, vector<128x128xbf16>, vector<2x128xf32> -> vector<2x128xf32>
    %c0_15 = arith.constant 0 : index
    %c0_16 = arith.constant 0 : index
    %24 = vector.load %arg5[%c0_15, %c0_16] : memref<1x128xf32, #tpu.memory_space<vmem>>, vector<1x128xf32>
    %25 = vector.broadcast %24 : vector<1x128xf32> to vector<2x128xf32>
    %26 = arith.addf %23, %25 : vector<2x128xf32>
    %27 = arith.mulf %26, %26 : vector<2x128xf32>
    %cst_17 = arith.constant dense<0.000000e+00> : vector<2xf32>
    %28 = vector.multi_reduction <add>, %27, %cst_17 [1] : vector<2x128xf32> to vector<2xf32>
    %29 = vector.shape_cast %28 : vector<2xf32> to vector<2x1xf32>
    %30 = math.rsqrt %29 : vector<2x1xf32>
    %31 = vector.broadcast %30 : vector<2x1xf32> to vector<2x128xf32>
    %32 = arith.mulf %26, %31 : vector<2x128xf32>
    %c0_18 = arith.constant 0 : index
    %c0_19 = arith.constant 0 : index
    %33 = vector.load %arg7[%c0_18, %c0_19] : memref<2x128xf32, #tpu.memory_space<vmem>>, vector<2x128xf32>
    tpu.vector_store %arg7[%c0_18, %c0_19], %32 {strides = array<i32>} : memref<2x128xf32, #tpu.memory_space<vmem>>, vector<2x128xf32>,
    return
  }
  func.func @transform_0(%arg0: i32) -> (i32, i32) {
    %c0_i32 = arith.constant 0 : i32
    %c0_i32_0 = arith.constant 0 : i32
    return %arg0, %c0_i32 : i32, i32
  }
  func.func @transform_1(%arg0: i32) -> (i32, i32) {
    %c0_i32 = arith.constant 0 : i32
    %c0_i32_0 = arith.constant 0 : i32
    %c0_i32_1 = arith.constant 0 : i32
    return %c0_i32, %c0_i32_0 : i32, i32
  }
  func.func @transform_2(%arg0: i32) -> (i32, i32) {
    %c0_i32 = arith.constant 0 : i32
    %c0_i32_0 = arith.constant 0 : i32
    %c0_i32_1 = arith.constant 0 : i32
    return %c0_i32, %c0_i32_0 : i32, i32
  }
  func.func @transform_3(%arg0: i32) -> (i32, i32) {
    %c0_i32 = arith.constant 0 : i32
    %c0_i32_0 = arith.constant 0 : i32
    %c0_i32_1 = arith.constant 0 : i32
    return %c0_i32, %c0_i32_0 : i32, i32
  }
  func.func @transform_4(%arg0: i32) -> (i32, i32) {
    %c0_i32 = arith.constant 0 : i32
    %c0_i32_0 = arith.constant 0 : i32
    %c0_i32_1 = arith.constant 0 : i32
    return %c0_i32, %c0_i32_0 : i32, i32
  }
  func.func @transform_5(%arg0: i32) -> (i32, i32) {
    %c0_i32 = arith.constant 0 : i32
    %c0_i32_0 = arith.constant 0 : i32
    %c0_i32_1 = arith.constant 0 : i32
    return %c0_i32, %c0_i32_0 : i32, i32
  }
  func.func @transform_6(%arg0: i32) -> (i32, i32) {
    %c0_i32 = arith.constant 0 : i32
    %c0_i32_0 = arith.constant 0 : i32
    return %arg0, %c0_i32 : i32, i32
  }
}

</mosaic_0001>

<bundles_post_ra>
// kernel: tpu_custom_call.1
= control target key start
LH: loop header
LB: loop body
LE: loop exit
PB: predicated region body
PF: predicated region fallthrough
CT: control target
= control target key end

     0   :  { %11 = vsyncpa [#allocation3], 0  ;;  %s745_s0 = inlined_call_operand.hbm [shape: bf16[32,128], index: 0, kind: input, shape index: {}]   ;;  %s746_s1 = inlined_call_operand.hbm [shape: bf16[128,128], index: 1, kind: input, shape index: {}]   ;;  %s747_s2 = inlined_call_operand.vmem [shape: f32[1,128], index: 2, kind: input, shape index: {}]   ;;  %s748_s3 = inlined_call_operand.hbm [shape: bf16[128,128], index: 3, kind: input, shape index: {}]   ;;  %s749_s4 = inlined_call_operand.vmem [shape: f32[1,128], index: 4, kind: input, shape index: {}]   ;;  %s750_s5 = inlined_call_operand.vmem [shape: f32[2,32], index: 5, kind: input, shape index: {}]   ;;  %s751_s6 = inlined_call_operand.hbm [shape: f32[2,128], index: 6, kind: output, shape index: {}]  }
   0x1   :  { %12 = vsyncpa [#allocation6], 0 }
   0x2   :  { %13 = vsyncpa [#allocation4], 0  ;;  %s667_s21 = smov [#allocation5]   ;;  %s668_s23 = smov [#allocation2]  }
   0x3   :  { %s31_s22 = sshll.u32 %s667_s21, 4  ;;  %s19_s24 = sshll.u32 %s668_s23, 4  ;;  %s32_s22 = int_to_ptr.vmem [resolvable:$true] %s31_s22  ;;  %s20_s24 = int_to_ptr.vmem [resolvable:$true] %s19_s24 }
   0x4   :  { %s589_s25 = scalar_lea.vmem %s32_s22, 1024  ;;  %p594_p1 = scmp.lt.s32.totalorder %s32_s22, %s32_s22 }
   0x5   :  { %p590_p0 = scmp.ne.s32.totalorder %s32_s22, %s589_s25  ;;  %p595_p2 = scmp.lt.s32.totalorder %s589_s25, %s589_s25 }
   0x7   :  { %p596_p3 = por %p595_p2, %p594_p1 }
   0x9   :  { %p597_p4 = pnand %p596_p3, %p590_p0 }
   0xb   :  { %600 = shalt.err (!%p597_p4)
}
   0xc   :  { %s669_s26 = smov 64   ;;  %s670_s27 = smov 4  }
   0xd   :  { %37 = dma.hbm_to_vmem [thread:$0]  %s746_s1, 1024, %s32_s22, [#allocation6], %s669_s26, %s669_s26, %s670_s27  }
   0xe   :  { %s609_s30 = scalar_lea.vmem %s20_s24, 256  ;;  %p614_p6 = scmp.lt.s32.totalorder %s20_s24, %s20_s24 }
   0xf   :  { %p610_p5 = scmp.ne.s32.totalorder %s20_s24, %s609_s30  ;;  %p615_p7 = scmp.lt.s32.totalorder %s609_s30, %s609_s30 }
  0x11   :  { %p616_p8 = por %p615_p7, %p614_p6 }
  0x13   :  { %p617_p9 = pnand %p616_p8, %p610_p5 }
  0x15   :  { %620 = shalt.err (!%p617_p9)
}
  0x16   :  { %25 = dma.hbm_to_vmem [thread:$0]  %s745_s0, 256, %s20_s24, [#allocation3], %s669_s26, %s669_s26, %s670_s27  }
  0x17   :  { %s671_s9 = smov [#allocation7]  }
  0x18   :  { %s45_s10 = sshll.u32 %s671_s9, 4  ;;  %s46_s10 = int_to_ptr.vmem [resolvable:$true] %s45_s10 }
  0x19   :  { %s629_s11 = scalar_lea.vmem %s46_s10, 1024  ;;  %p634_p11 = scmp.lt.s32.totalorder %s46_s10, %s46_s10 }
  0x1a   :  { %p630_p10 = scmp.ne.s32.totalorder %s46_s10, %s629_s11  ;;  %p635_p12 = scmp.lt.s32.totalorder %s629_s11, %s629_s11 }
  0x1c   :  { %p636_p13 = por %p635_p12, %p634_p11 }
  0x1e   :  { %p637_p0 = pnand %p636_p13, %p630_p10 }
  0x20   :  { %640 = shalt.err (!%p637_p0)
}
  0x21   :  { %51 = dma.hbm_to_vmem [thread:$0]  %s748_s3, 1024, %s46_s10, [#allocation6], %s669_s26, %s669_s26, %s670_s27  }
  0x22   :  { %661 = dma.done.wait [#allocation3], 256  }
  0x23   :  { %662 = vsyncadd [#allocation3], 4294967040 }
  0x24   :  { %663 = dma.done.wait [#allocation6], 2048  }
  0x25   :  { %664 = vsyncadd [#allocation6], 4294965248  ;;  %v553_v0 = vld [vmem:[#allocation5 + $0x38] sm:$0xff]   ;;  %v554_v1 = vld [vmem:[#allocation5 + $0x30] sm:$0xff]   ;;  %v672_v10 = vmov 0.0   ;;  %vm673_vm0 = vmmov 0  }
  0x26   :  { %494 = vmatprep.subr.bf16.mxu0 %v553_v0  ;;  %v555_v2 = vld [vmem:[#allocation5 + $0x28] sm:$0xff]   ;;  %v556_v3 = vld [vmem:[#allocation5 + $0x20] sm:$0xff]   ;;  %v561_v4 = vld [vmem:[#allocation2] sm:$0xff]   ;;  %525 = vmatprep.subr.bf16.mxu1 %v672_v10  ;;  %vm239_vm1 = vcmask 261120   ;;  %vm426_vm2 = vcmask 1041408  }
  0x27   :  { %495 = vmatpush3.bf16.msra.mxu0 %v553_v0  ;;  %v557_v5 = vld [vmem:[#allocation5 + $0x18] sm:$0xff]   ;;  %510 = vmatprep.mubr.bf16.mxu0 %v561_v4  ;;  %v558_v6 = vld [vmem:[#allocation5 + $0x10] sm:$0xff]   ;;  %v559_v7 = vld [vmem:[#allocation5 + $0x8] sm:$0xff]  }
  0x28   :  { %496 = vmatprep.subr.bf16.mxu0 %v554_v1  ;;  %v560_v8 = vld [vmem:[#allocation5] sm:$0xff]   ;;  %v562_v9 = vld [vmem:[#allocation2 + $0x8] sm:$0xff]   ;;  %541 = vmatprep.mubr.msk.bf16.mxu1 %vm673_vm0, %v672_v10  ;;  %v564_v12 = vld [vmem:[#allocation7 + $0x30] sm:$0xff]  }
  0x29   :  { %v563_v11 = vld [vmem:[#allocation7 + $0x38] sm:$0xff]   ;;  %v565_v13 = vld [vmem:[#allocation7 + $0x28] sm:$0xff]   ;;  %v566_v14 = vld [vmem:[#allocation7 + $0x20] sm:$0xff]  }
  0x2a   :  { %526 = vmatpush3.bf16.msra.mxu1 %v563_v11  ;;  %v567_v15 = vld [vmem:[#allocation7 + $0x18] sm:$0xff]   ;;  %v568_v16 = vld [vmem:[#allocation7 + $0x10] sm:$0xff]   ;;  %v569_v17 = vld [vmem:[#allocation7 + $0x8] sm:$0xff]  }
  0x2b   :  { %497 = vmatpush3.bf16.msra.mxu0 %v554_v1  ;;  %527 = vmatprep.subr.bf16.mxu1 %v672_v10  ;;  %v449_v18 = vld [vmem:[%s747_s2] ss:$0 sm:$0xff]  ;;  %v570_v0 = vld [vmem:[#allocation7] sm:$0xff]  }
  0x2c   :  { %498 = vmatprep.subr.bf16.mxu0 %v555_v2  ;;  %v238_v63 = vld [vmem:[%s750_s5] sm:$0x3]  ;;  %s674_s5 = smov [#allocation8]  }
  0x2d   :  { %v461_v4 = vld [vmem:[%s749_s4] ss:$0 sm:$0xff]  ;;  %s439_s16 = sshll.u32 %s674_s5, 4  ;;  %s440_s16 = int_to_ptr.vmem [resolvable:$true] %s439_s16 }
  0x2e   :  { %528 = vmatpush3.bf16.msra.mxu1 %v564_v12  ;;  %s641_s17 = scalar_lea.vmem %s440_s16, 32  ;;  %p646_p2 = scmp.lt.s32.totalorder %s440_s16, %s440_s16 }
  0x2f   :  { %499 = vmatpush3.bf16.msra.mxu0 %v555_v2  ;;  %529 = vmatprep.subr.bf16.mxu1 %v672_v10  ;;  %p642_p1 = scmp.ne.s32.totalorder %s440_s16, %s641_s17  ;;  %p647_p3 = scmp.lt.s32.totalorder %s641_s17, %s641_s17 }
  0x30   :  { %500 = vmatprep.subr.bf16.mxu0 %v556_v3 }
  0x31   :  { %p648_p4 = por %p647_p3, %p646_p2 }
  0x32   :  { %530 = vmatpush3.bf16.msra.mxu1 %v565_v13 }
  0x33   :  { %501 = vmatpush3.bf16.msra.mxu0 %v556_v3  ;;  %531 = vmatprep.subr.bf16.mxu1 %v672_v10  ;;  %p649_p5 = pnand %p648_p4, %p642_p1 }
  0x34   :  { %502 = vmatprep.subr.bf16.mxu0 %v557_v5 }
  0x36   :  { %532 = vmatpush3.bf16.msra.mxu1 %v566_v14 }
  0x37   :  { %503 = vmatpush3.bf16.msra.mxu0 %v557_v5  ;;  %533 = vmatprep.subr.bf16.mxu1 %v672_v10 }
  0x38   :  { %504 = vmatprep.subr.bf16.mxu0 %v558_v6 }
  0x3a   :  { %534 = vmatpush3.bf16.msra.mxu1 %v567_v15 }
  0x3b   :  { %505 = vmatpush3.bf16.msra.mxu0 %v558_v6  ;;  %535 = vmatprep.subr.bf16.mxu1 %v672_v10 }
  0x3c   :  { %506 = vmatprep.subr.bf16.mxu0 %v559_v7 }
  0x3e   :  { %536 = vmatpush3.bf16.msra.mxu1 %v568_v16 }
  0x3f   :  { %507 = vmatpush3.bf16.msra.mxu0 %v559_v7  ;;  %537 = vmatprep.subr.bf16.mxu1 %v672_v10 }
  0x40   :  { %508 = vmatprep.subr.bf16.mxu0 %v560_v8 }
  0x42   :  { %538 = vmatpush3.bf16.msra.mxu1 %v569_v17 }
  0x43   :  { %509 = vmatpush3.bf16.msra.mxu0 %v560_v8  ;;  %539 = vmatprep.subr.bf16.mxu1 %v672_v10 }
  0x44   :  { %514 = vmatprep.subr.mxu0 %v672_v10 }
  0x46   :  { %511 = vmatmul.mubr.bf16.vlgmr.msra.gmra.mxu0 %v562_v9  ;;  %540 = vmatpush3.bf16.msra.mxu1 %v570_v0 }
  0x47   :  { %522 = vmatprep.mubr.msk.f32.mxu0 %vm673_vm0, %v672_v10 }
 0x106   :  { %v512_v19 = vpop.f32.mrf.mxu0 }
 0x107   :  { %v196_v20 = vadd.f32 %v512_v19, %v449_v18 }
 0x108   :  { %v187_v21 = vpop.f32.mrf.mxu0 }
 0x109   :  { %v204_v22 = vmul.f32 %v196_v20, %v196_v20  ;;  %v188_v23 = vadd.f32 %v449_v18, %v187_v21 }
 0x10a   :  { %v513_v24 = vpop.f32.mrf.mxu0 }
 0x10b   :  { %v208_v25 = vmul.f32 %v204_v22, %v196_v20  ;;  %v202_v26 = vmul.f32 %v188_v23, %v188_v23  ;;  %v199_v27 = vadd.f32 %v513_v24, %v449_v18 }
 0x10c   :  { %v190_v28 = vpop.f32.mrf.mxu0 }
 0x10d   :  { %v212_v29 = vmul.f32 0.044715, %v208_v25  ;;  %v206_v30 = vmul.f32 %v202_v26, %v188_v23  ;;  %v205_v31 = vmul.f32 %v199_v27, %v199_v27  ;;  %v191_v32 = vadd.f32 %v449_v18, %v190_v28 }
 0x10f   :  { %v216_v33 = vadd.f32 %v212_v29, %v196_v20  ;;  %v210_v34 = vmul.f32 0.044715, %v206_v30  ;;  %v209_v35 = vmul.f32 %v205_v31, %v199_v27  ;;  %v203_v36 = vmul.f32 %v191_v32, %v191_v32 }
 0x111   :  { %v220_v37 = vmul.f32 0.7978846, %v216_v33  ;;  %v214_v38 = vadd.f32 %v210_v34, %v188_v23  ;;  %v213_v39 = vmul.f32 0.044715, %v209_v35  ;;  %v207_v40 = vmul.f32 %v203_v36, %v191_v32 }
 0x113   :  { %571 = vtanh.f32 %v220_v37  ;;  %v218_v41 = vmul.f32 0.7978846, %v214_v38  ;;  %v217_v42 = vadd.f32 %v213_v39, %v199_v27  ;;  %v211_v43 = vmul.f32 0.044715, %v207_v40 }
 0x115   :  { %v221_v44 = vmul.f32 0.7978846, %v217_v42  ;;  %v215_v45 = vadd.f32 %v211_v43, %v191_v32  ;;  %573 = vtanh.f32 %v218_v41 }
 0x117   :  { %575 = vtanh.f32 %v221_v44  ;;  %v219_v46 = vmul.f32 0.7978846, %v215_v45 }
 0x119   :  { %577 = vtanh.f32 %v219_v46 }
 0x120   :  { %v572_v47 = vpop.eup %571 }
 0x121   :  { %v228_v49 = vadd.f32 1.0, %v572_v47 }
 0x122   :  { %v574_v48 = vpop.eup %573 }
 0x123   :  { %v232_v54 = vmul.f32 0.5, %v228_v49  ;;  %v226_v56 = vadd.f32 1.0, %v574_v48 }
 0x124   :  { %v576_v50 = vpop.eup %575 }
 0x125   :  { %v229_v51 = vadd.f32 1.0, %v576_v50  ;;  %v236_v59 = vmul.f32 %v232_v54, %v196_v20  ;;  %v230_v60 = vmul.f32 0.5, %v226_v56 }
 0x126   :  { %v578_v52 = vpop.eup %577 }
 0x127   :  { %v233_v53 = vmul.f32 0.5, %v229_v51  ;;  %v227_v55 = vadd.f32 1.0, %v578_v52  ;;  %v234_v62 = vmul.f32 %v230_v60, %v188_v23 }
 0x129   :  { %v237_v57 = vmul.f32 %v233_v53, %v199_v27  ;;  %v231_v58 = vmul.f32 0.5, %v227_v55 }
 0x12b   :  { %515 = vmatpush3.msra.mxu0 %v237_v57  ;;  %v235_v61 = vmul.f32 %v231_v58, %v191_v32 }
 0x12c   :  { %516 = vmatprep.subr.mxu0 %v672_v10 }
 0x12d   :  { %517 = vmatpush3.msra.mxu0 %v236_v59 }
 0x12e   :  { %518 = vmatprep.subr.mxu0 %v672_v10 }
 0x12f   :  { %519 = vmatpush3.msra.mxu0 %v235_v61 }
 0x130   :  { %520 = vmatprep.subr.mxu0 %v672_v10 }
 0x131   :  { %521 = vmatpush3.msra.mxu0 %v234_v62 }
 0x132   :  { %523 = vmatmul.mubr.msk.f32.vlgmr.msra.gmra.mxu0 %vm239_vm1, %v238_v63 }
 0x1f2   :  { %v309_v1 = vpop.f32.mrf.mxu0 }
 0x1f3   :  { %v313_v2 = vpack.c.bf16 %v309_v1, %v309_v1 }
 0x1f4   :  { %v524_v3 = vpop.f32.mrf.mxu0 }
 0x1f5   :  { %542 = vmatmul.mubr.bf16.vlgmr.msra.gmra.mxu1 %v313_v2 }
 0x2b5   :  { %v419_v5 = vpop.f32.mrf.mxu1 }
 0x2b6   :  { %v420_v6 = vadd.f32 %v461_v4, %v419_v5 }
 0x2b7   :  { %v543_v7 = vpop.f32.mrf.mxu1 }
 0x2b8   :  { %v425_v8 = vmul.f32 %v420_v6, %v420_v6 }
 0x2b9   :  { %v422_v9 = vpop.f32.mrf.mxu1 }
 0x2ba   :  { %v427_v11 = vsel %vm426_vm2, %v425_v8, 0.0 }
 0x2bb   :  { %v544_v10 = vpop.f32.mrf.mxu1  ;;  %428 = vadd.xlane.f32.xlu0 %v427_v11 }
 0x344   :  { %v429_v12 = vpop.xlane.xlu0 %428 }
 0x345   :  { %579 = vrsqrt.f32 %v429_v12 }
 0x352   :  { %v580_v13 = vpop.eup %579 }
 0x353   :  { %v431_v14 = vmul.f32 %v580_v13, %v420_v6 }
 0x355   :  { %432 = vst [vmem:[#allocation8] sm:$0x3] %v431_v14 }
 0x356   :  { %652 = shalt.err (!%p649_p5)
}
 0x357   :  { %442 = dma.vmem_to_hbm [thread:$0]  %s440_s16, 32, %s751_s6, [#allocation4]  }
 0x358   :  { %665 = dma.done.wait [#allocation4], 32  }
 0x359   :  { %666 = vsyncadd [#allocation4], 4294967264 }
 0x35a   :  { %446 = vsyncpa [#allocation3], 1 }
 0x35b   :  { %447 = vsyncpa [#allocation6], 1 }
 0x35c   :  { %448 = vsyncpa [#allocation4], 1 }

</bundles_post_ra>
